<compile_context>
chip_gen: v7x
topology: tpu7x:2x2x1
jax: 0.10.0
libtpu: 0.0.40
codegen_flags: <defaults>
</compile_context>

<pallas_src>
import functools
import math

import jax
import jax.numpy as jnp
from jax.experimental import pallas as pl
from jax.experimental.pallas import tpu as pltpu


# ---------------------------------------------------------------------------
# In-kernel exact GELU (erf-based, matching the PyTorch reference gelu).
# lax.erf may not lower in Mosaic, so we use the Abramowitz & Stegun 7.1.26
# rational approximation (|error| <= 1.5e-7, i.e. exact at f32 precision) built
# only from exp / mul / add / select, which all lower cleanly.
# ---------------------------------------------------------------------------
_SQRT_HALF = 0.7071067811865476


def _erf_approx(x):
    a1, a2, a3, a4, a5 = (0.254829592, -0.284496736, 1.421413741,
                          -1.453152027, 1.061405429)
    p = 0.3275911
    z = jnp.abs(x)
    t = 1.0 / (1.0 + p * z)
    poly = ((((a5 * t + a4) * t + a3) * t + a2) * t + a1) * t
    y = 1.0 - poly * jnp.exp(-z * z)
    return jnp.where(x >= 0.0, y, -y)


def _gelu(x):
    # x * 0.5 * (1 + erf(x / sqrt(2)))  -- exact (non-tanh) BERT gelu.
    return x * 0.5 * (1.0 + _erf_approx(x * _SQRT_HALF))


# ---------------------------------------------------------------------------
# Tiling helpers.
# ---------------------------------------------------------------------------
def _pick_tile_rows(rows, desired):
    # Round rows up to the sublane multiple (8); never exceed the desired tile.
    r8 = ((rows + 7) // 8) * 8
    return min(desired, r8)


def _pick_tile_k(k_dim, max_tk=512):
    # Largest contraction tile <= max_tk that divides K (full K if it already fits).
    if k_dim <= max_tk:
        return k_dim
    for tk in range(max_tk, 0, -128):
        if tk > 0 and k_dim % tk == 0:
            return tk
    return k_dim


def _pad_rows(x, tile):
    pad = (-x.shape[0]) % tile
    if pad:
        x = jnp.pad(x, ((0, pad), (0, 0)))
    return x, pad


_COMPILER_PARAMS = dict(vmem_limit_bytes=64 * 1024 * 1024)


# ---------------------------------------------------------------------------
# Kernel 1: dense (+ optional gelu), K-tiled with f32 accumulator.
# ---------------------------------------------------------------------------
def _dense_act_kernel(x_ref, w_ref, b_ref, o_ref, acc_ref, *, activation):
    kk = pl.program_id(1)

    @pl.when(kk == 0)
    def _():
        acc_ref[...] = jnp.zeros_like(acc_ref)

    # Native-dtype operands on the MXU, f32 accumulation.
    acc_ref[...] += jnp.dot(x_ref[...], w_ref[...],
                            preferred_element_type=jnp.float32)

    @pl.when(kk == pl.num_programs(1) - 1)
    def _():
        y = acc_ref[...] + b_ref[...].astype(jnp.float32)
        if activation == "gelu":
            y = _gelu(y)
        o_ref[...] = y.astype(o_ref.dtype)


def dense_act(x2, w, b, *, activation="none", tile_rows=256, max_tile_k=512):
    """y = act(x2 @ w + b).  x2: [rows, K], w: [K, N], b: [N]."""
    rows, K = x2.shape
    Kw, N = w.shape
    assert K == Kw
    tm = _pick_tile_rows(rows, tile_rows)
    x2p, pad = _pad_rows(x2, tm)
    rows_p = rows + pad
    tk = _pick_tile_k(K, max_tile_k)

    out = pl.pallas_call(
        functools.partial(_dense_act_kernel, activation=activation),
        out_shape=jax.ShapeDtypeStruct((rows_p, N), x2.dtype),
        grid_spec=pltpu.PrefetchScalarGridSpec(
            num_scalar_prefetch=0,
            grid=(rows_p // tm, K // tk),
            in_specs=[
                pl.BlockSpec((tm, tk), lambda i, k: (i, k)),   # activations
                pl.BlockSpec((tk, N), lambda i, k: (k, 0)),    # weight
                pl.BlockSpec((1, N), lambda i, k: (0, 0)),     # bias
            ],
            out_specs=pl.BlockSpec((tm, N), lambda i, k: (i, 0)),
            scratch_shapes=[pltpu.VMEM((tm, N), jnp.float32)],
        ),
        compiler_params=pltpu.CompilerParams(
            dimension_semantics=("parallel", "arbitrary"),
            **_COMPILER_PARAMS),
    )(x2p, w, b.reshape(1, N))
    return out[:rows] if pad else out


# ---------------------------------------------------------------------------
# Kernel 2: dense + residual add + LayerNorm, K-tiled with f32 accumulator.
# ---------------------------------------------------------------------------
def _dense_res_ln_kernel(x_ref, res_ref, w_ref, b_ref, g_ref, beta_ref,
                         o_ref, acc_ref, *, eps):
    kk = pl.program_id(1)

    @pl.when(kk == 0)
    def _():
        acc_ref[...] = jnp.zeros_like(acc_ref)

    acc_ref[...] += jnp.dot(x_ref[...], w_ref[...],
                            preferred_element_type=jnp.float32)

    @pl.when(kk == pl.num_programs(1) - 1)
    def _():
        # TODO(synk): dropout before the residual add is identity in eval mode;
        # training-mode dropout would use pltpu.prng_seed / pltpu.prng_random_bits.
        y = (acc_ref[...] + b_ref[...].astype(jnp.float32)
             + res_ref[...].astype(jnp.float32))
        mean = jnp.mean(y, axis=-1, keepdims=True)
        c = y - mean
        var = jnp.mean(c * c, axis=-1, keepdims=True)
        inv = jax.lax.rsqrt(var + eps)
        o_ref[...] = (c * inv * g_ref[...].astype(jnp.float32)
                      + beta_ref[...].astype(jnp.float32)).astype(o_ref.dtype)


def dense_residual_layernorm(x2, res2, w, b, gamma, beta, *, eps,
                             tile_rows=256, max_tile_k=512):
    """LayerNorm(x2 @ w + b + res2) * gamma + beta.  x2: [rows, K], res2: [rows, N]."""
    rows, K = x2.shape
    Kw, N = w.shape
    assert K == Kw and res2.shape == (rows, N)
    tm = _pick_tile_rows(rows, tile_rows)
    x2p, pad = _pad_rows(x2, tm)
    res2p, _ = _pad_rows(res2, tm)
    rows_p = rows + pad
    tk = _pick_tile_k(K, max_tile_k)

    out = pl.pallas_call(
        functools.partial(_dense_res_ln_kernel, eps=eps),
        out_shape=jax.ShapeDtypeStruct((rows_p, N), x2.dtype),
        grid_spec=pltpu.PrefetchScalarGridSpec(
            num_scalar_prefetch=0,
            grid=(rows_p // tm, K // tk),
            in_specs=[
                pl.BlockSpec((tm, tk), lambda i, k: (i, k)),   # activations
                pl.BlockSpec((tm, N), lambda i, k: (i, 0)),    # residual rows
                pl.BlockSpec((tk, N), lambda i, k: (k, 0)),    # weight
                pl.BlockSpec((1, N), lambda i, k: (0, 0)),     # bias
                pl.BlockSpec((1, N), lambda i, k: (0, 0)),     # LN gamma
                pl.BlockSpec((1, N), lambda i, k: (0, 0)),     # LN beta
            ],
            out_specs=pl.BlockSpec((tm, N), lambda i, k: (i, 0)),
            scratch_shapes=[pltpu.VMEM((tm, N), jnp.float32)],
        ),
        compiler_params=pltpu.CompilerParams(
            dimension_semantics=("parallel", "arbitrary"),
            **_COMPILER_PARAMS),
    )(x2p, res2p, w, b.reshape(1, N), gamma.reshape(1, N), beta.reshape(1, N))
    return out[:rows] if pad else out


# ---------------------------------------------------------------------------
# Kernel 3: per-(batch, head) self-attention.
# ---------------------------------------------------------------------------
def _attention_kernel(q_ref, k_ref, v_ref, m_ref, o_ref, *, scale):
    q = q_ref[0, 0]                    # (S, hd)
    k = k_ref[0, 0]                    # (S, hd)
    v = v_ref[0, 0]                    # (S, hd)
    # scores = q @ k^T (contract head dims), f32 accumulation.
    s = jax.lax.dot_general(q, k, (((1,), (1,)), ((), ())),
                            preferred_element_type=jnp.float32)
    s = s * scale + m_ref[...].astype(jnp.float32)      # (S,S) + (1,S) broadcast
    s = s - jnp.max(s, axis=-1, keepdims=True)
    p = jnp.exp(s)
    p = p / jnp.sum(p, axis=-1, keepdims=True)
    # TODO(synk): attention-probs dropout is identity in eval mode.
    ctx = jnp.dot(p.astype(v.dtype), v, preferred_element_type=jnp.float32)
    o_ref[0, 0] = ctx.astype(o_ref.dtype)


def attention(q, k, v, mask2, *, scale):
    """q/k/v: [B, nh, S, hd]; mask2: [B, S] additive mask."""
    B, nh, S, hd = q.shape
    return pl.pallas_call(
        functools.partial(_attention_kernel, scale=scale),
        out_shape=jax.ShapeDtypeStruct((B, nh, S, hd), q.dtype),
        grid_spec=pltpu.PrefetchScalarGridSpec(
            num_scalar_prefetch=0,
            grid=(B, nh),
            in_specs=[
                pl.BlockSpec((1, 1, S, hd), lambda b, h: (b, h, 0, 0)),
                pl.BlockSpec((1, 1, S, hd), lambda b, h: (b, h, 0, 0)),
                pl.BlockSpec((1, 1, S, hd), lambda b, h: (b, h, 0, 0)),
                pl.BlockSpec((1, S), lambda b, h: (b, 0)),
            ],
            out_specs=pl.BlockSpec((1, 1, S, hd), lambda b, h: (b, h, 0, 0)),
        ),
        compiler_params=pltpu.CompilerParams(
            dimension_semantics=("parallel", "parallel"),
            **_COMPILER_PARAMS),
    )(q, k, v, mask2)


# ---------------------------------------------------------------------------
# BertLayer forward.
# ---------------------------------------------------------------------------
def bert_layer(hidden_states, attention_mask, params, *, num_heads,
               eps=1e-12, tile_rows=256):
    """hidden_states: [B, S, H]; attention_mask: [B, 1, 1, S] additive mask."""
    B, S, H = hidden_states.shape
    hd = H // num_heads
    rows = B * S
    x2 = hidden_states.reshape(rows, H)

    # --- BertSelfAttention: fused QKV projection, then per-head attention ---
    wqkv = jnp.concatenate([params["wq"], params["wk"], params["wv"]], axis=1)  # [H, 3H]
    bqkv = jnp.concatenate([params["bq"], params["bk"], params["bv"]], axis=0)  # [3H]
    qkv = dense_act(x2, wqkv, bqkv, activation="none", tile_rows=tile_rows)     # [rows, 3H]

    def split_heads(t):   # [rows, H] -> [B, nh, S, hd]  (layout plumbing in XLA)
        return t.reshape(B, S, num_heads, hd).transpose(0, 2, 1, 3)

    q = split_heads(qkv[:, :H])
    k = split_heads(qkv[:, H:2 * H])
    v = split_heads(qkv[:, 2 * H:])
    mask2 = attention_mask.reshape(B, S)

    ctx = attention(q, k, v, mask2, scale=1.0 / math.sqrt(hd))                  # [B,nh,S,hd]
    ctx2 = ctx.transpose(0, 2, 1, 3).reshape(rows, H)

    # --- BertSelfOutput: dense + dropout(identity) + residual + LayerNorm ---
    attn_out = dense_residual_layernorm(
        ctx2, x2, params["wo"], params["bo"], params["ln1_g"], params["ln1_b"],
        eps=eps, tile_rows=tile_rows)

    # --- BertIntermediate: dense + gelu ---
    inter = dense_act(attn_out, params["wi"], params["bi"], activation="gelu",
                      tile_rows=tile_rows)

    # --- BertOutput: dense + dropout(identity) + residual + LayerNorm ---
    out = dense_residual_layernorm(
        inter, attn_out, params["w2"], params["b2"], params["ln2_g"], params["ln2_b"],
        eps=eps, tile_rows=tile_rows)

    return out.reshape(B, S, H)


# ---------------------------------------------------------------------------
# Pure-JAX reference (matches the PyTorch module semantics, eval mode).
# ---------------------------------------------------------------------------
def _gelu_ref(x):
    return x * 0.5 * (1.0 + jax.scipy.special.erf(x / math.sqrt(2.0)))


def _layernorm_ref(x, gamma, beta, eps):
    u = x.mean(-1, keepdims=True)
    s = ((x - u) ** 2).mean(-1, keepdims=True)
    return (x - u) / jnp.sqrt(s + eps) * gamma + beta


def reference_bert_layer(hidden_states, attention_mask, params, *, num_heads,
                         eps=1e-12):
    B, S, H = hidden_states.shape
    hd = H // num_heads

    def split_heads(t):
        return t.reshape(B, S, num_heads, hd).transpose(0, 2, 1, 3)

    q = split_heads(hidden_states @ params["wq"] + params["bq"])
    k = split_heads(hidden_states @ params["wk"] + params["bk"])
    v = split_heads(hidden_states @ params["wv"] + params["bv"])
    scores = jnp.einsum("bhqd,bhkd->bhqk", q, k) / math.sqrt(hd) + attention_mask
    probs = jax.nn.softmax(scores, axis=-1)
    ctx = jnp.einsum("bhqk,bhkd->bhqd", probs, v).transpose(0, 2, 1, 3).reshape(B, S, H)

    attn_out = _layernorm_ref(ctx @ params["wo"] + params["bo"] + hidden_states,
                              params["ln1_g"], params["ln1_b"], eps)
    inter = _gelu_ref(attn_out @ params["wi"] + params["bi"])
    out = _layernorm_ref(inter @ params["w2"] + params["b2"] + attn_out,
                         params["ln2_g"], params["ln2_b"], eps)
    return out


if __name__ == "__main__":
    B, S, H, NH, I = 2, 8, 32, 4, 64   # small test shapes (intermediate = 2*H)
    key = jax.random.PRNGKey(0)
    ks = jax.random.split(key, 14)

    def rnd(k, shape, scale=1.0):
        return jax.random.normal(k, shape, dtype=jnp.float32) * scale

    hidden_states = rnd(ks[0], (B, S, H))
    # Additive attention mask [B, 1, 1, S]: batch 1 has its last two positions masked.
    valid = jnp.ones((B, S), jnp.float32).at[1, S - 2:].set(0.0)
    attention_mask = (1.0 - valid)[:, None, None, :] * -10000.0

    params = dict(
        wq=rnd(ks[1], (H, H), H ** -0.5), bq=rnd(ks[2], (H,), 0.02),
        wk=rnd(ks[3], (H, H), H ** -0.5), bk=rnd(ks[4], (H,), 0.02),
        wv=rnd(ks[5], (H, H), H ** -0.5), bv=rnd(ks[6], (H,), 0.02),
        wo=rnd(ks[7], (H, H), H ** -0.5), bo=rnd(ks[8], (H,), 0.02),
        ln1_g=jnp.ones((H,), jnp.float32), ln1_b=jnp.zeros((H,), jnp.float32),
        wi=rnd(ks[9], (H, I), H ** -0.5), bi=rnd(ks[10], (I,), 0.02),
        w2=rnd(ks[11], (I, H), I ** -0.5), b2=rnd(ks[12], (H,), 0.02),
        ln2_g=jnp.ones((H,), jnp.float32), ln2_b=jnp.zeros((H,), jnp.float32),
    )

    out = bert_layer(hidden_states, attention_mask, params, num_heads=NH)
    out = jax.block_until_ready(out)

    ref = reference_bert_layer(hidden_states, attention_mask, params, num_heads=NH)
    assert out.shape == (B, S, H)
    err = float(jnp.max(jnp.abs(out - ref)))
    assert jnp.allclose(out, ref, atol=2e-4, rtol=2e-4), f"max err {err}"

    print("KERNEL_OK")
</pallas_src>

<mosaic_0001>
module attributes {stable_mosaic.version = 11 : i64} {
  func.func @_dense_act_kernel(%arg0: i32, %arg1: i32, %arg2: memref<16x32xf32, #tpu.memory_space<vmem>>, %arg3: memref<32x96xf32, #tpu.memory_space<vmem>>, %arg4: memref<1x96xf32, #tpu.memory_space<vmem>>, %arg5: memref<16x96xf32, #tpu.memory_space<vmem>>, %arg6: memref<16x96xf32, #tpu.memory_space<vmem>>) attributes {dimension_semantics = [#tpu.dimension_semantics<parallel>, #tpu.dimension_semantics<arbitrary>], iteration_bounds = array<i64: 1, 1>, scalar_prefetch = 0 : i64, scratch_operands = 1 : i64, tpu.core_type = #tpu.core_type<tc>, window_params = [{transform_indices = @transform_0, window_bounds = array<i64: 16, 32>}, {transform_indices = @transform_1, window_bounds = array<i64: 32, 96>}, {pipeline_mode = #tpu.pipeline_mode<synchronous>, transform_indices = @transform_2, window_bounds = array<i64: 1, 96>}, {transform_indices = @transform_3, window_bounds = array<i64: 16, 96>}]} {
    %c0_i32 = arith.constant 0 : i32
    %0 = arith.cmpi eq, %arg1, %c0_i32 : i32
    %1 = arith.extui %0 : i1 to i32
    %c0_i32_0 = arith.constant 0 : i32
    %2 = arith.cmpi ne, %1, %c0_i32_0 : i32
    scf.if %2 {
      %cst_10 = arith.constant 0.000000e+00 : f32
      %12 = vector.broadcast %cst_10 : f32 to vector<16x96xf32>
      %c0_11 = arith.constant 0 : index
      %c0_12 = arith.constant 0 : index
      %13 = vector.load %arg6[%c0_11, %c0_12] : memref<16x96xf32, #tpu.memory_space<vmem>>, vector<16x96xf32>
      tpu.vector_store %arg6[%c0_11, %c0_12], %12 {strides = array<i32>} : memref<16x96xf32, #tpu.memory_space<vmem>>, vector<16x96xf32>,
    } else {
    }
    %c0 = arith.constant 0 : index
    %c0_1 = arith.constant 0 : index
    %3 = vector.load %arg6[%c0, %c0_1] : memref<16x96xf32, #tpu.memory_space<vmem>>, vector<16x96xf32>
    %c0_2 = arith.constant 0 : index
    %c0_3 = arith.constant 0 : index
    %4 = vector.load %arg2[%c0_2, %c0_3] : memref<16x32xf32, #tpu.memory_space<vmem>>, vector<16x32xf32>
    %c0_4 = arith.constant 0 : index
    %c0_5 = arith.constant 0 : index
    %5 = vector.load %arg3[%c0_4, %c0_5] : memref<32x96xf32, #tpu.memory_space<vmem>>, vector<32x96xf32>
    %cst = arith.constant dense<0.000000e+00> : vector<16x96xf32>
    %6 = tpu.matmul %4, %5, %cst {dimension_numbers = #tpu.dot_dimension_numbers<[1], [0], [0], [1], [0, 0, 1, 1], [], []>} : vector<16x32xf32>, vector<32x96xf32>, vector<16x96xf32> -> vector<16x96xf32>
    %7 = arith.addf %3, %6 : vector<16x96xf32>
    %c0_6 = arith.constant 0 : index
    %c0_7 = arith.constant 0 : index
    %8 = vector.load %arg6[%c0_6, %c0_7] : memref<16x96xf32, #tpu.memory_space<vmem>>, vector<16x96xf32>
    tpu.vector_store %arg6[%c0_6, %c0_7], %7 {strides = array<i32>} : memref<16x96xf32, #tpu.memory_space<vmem>>, vector<16x96xf32>,
    %c0_i32_8 = arith.constant 0 : i32
    %9 = arith.cmpi eq, %arg1, %c0_i32_8 : i32
    %10 = arith.extui %9 : i1 to i32
    %c0_i32_9 = arith.constant 0 : i32
    %11 = arith.cmpi ne, %10, %c0_i32_9 : i32
    scf.if %11 {
      %c0_10 = arith.constant 0 : index
      %c0_11 = arith.constant 0 : index
      %12 = vector.load %arg6[%c0_10, %c0_11] : memref<16x96xf32, #tpu.memory_space<vmem>>, vector<16x96xf32>
      %c0_12 = arith.constant 0 : index
      %c0_13 = arith.constant 0 : index
      %13 = vector.load %arg4[%c0_12, %c0_13] : memref<1x96xf32, #tpu.memory_space<vmem>>, vector<1x96xf32>
      %14 = vector.broadcast %13 : vector<1x96xf32> to vector<16x96xf32>
      %15 = arith.addf %12, %14 : vector<16x96xf32>
      %c0_14 = arith.constant 0 : index
      %c0_15 = arith.constant 0 : index
      %16 = vector.load %arg5[%c0_14, %c0_15] : memref<16x96xf32, #tpu.memory_space<vmem>>, vector<16x96xf32>
      tpu.vector_store %arg5[%c0_14, %c0_15], %15 {strides = array<i32>} : memref<16x96xf32, #tpu.memory_space<vmem>>, vector<16x96xf32>,
    } else {
    }
    return
  }
  func.func @transform_0(%arg0: i32, %arg1: i32) -> (i32, i32) {
    %c0_i32 = arith.constant 0 : i32
    return %arg0, %arg1 : i32, i32
  }
  func.func @transform_1(%arg0: i32, %arg1: i32) -> (i32, i32) {
    %c0_i32 = arith.constant 0 : i32
    %c0_i32_0 = arith.constant 0 : i32
    return %arg1, %c0_i32 : i32, i32
  }
  func.func @transform_2(%arg0: i32, %arg1: i32) -> (i32, i32) {
    %c0_i32 = arith.constant 0 : i32
    %c0_i32_0 = arith.constant 0 : i32
    %c0_i32_1 = arith.constant 0 : i32
    return %c0_i32, %c0_i32_0 : i32, i32
  }
  func.func @transform_3(%arg0: i32, %arg1: i32) -> (i32, i32) {
    %c0_i32 = arith.constant 0 : i32
    %c0_i32_0 = arith.constant 0 : i32
    return %arg0, %c0_i32 : i32, i32
  }
}

</mosaic_0001>

<bundles_post_ra>
// kernel: tpu_custom_call.1
= control target key start
LH: loop header
LB: loop body
LE: loop exit
PB: predicated region body
PF: predicated region fallthrough
CT: control target
= control target key end

     0   :  { %8 = vsyncpa [#allocation4], 0  ;;  %s416_s0 = inlined_call_operand.hbm [shape: f32[16,32], index: 0, kind: input, shape index: {}]   ;;  %s417_s1 = inlined_call_operand.hbm [shape: f32[32,96], index: 1, kind: input, shape index: {}]   ;;  %s418_s2 = inlined_call_operand.hbm [shape: f32[1,96], index: 2, kind: input, shape index: {}]   ;;  %s419_s3 = inlined_call_operand.hbm [shape: f32[16,96], index: 3, kind: output, shape index: {}]  }
   0x1   :  { %9 = vsyncpa [#allocation7], 0 }
   0x2   :  { %10 = vsyncpa [#allocation5], 0  ;;  %s319_s12 = smov [#allocation6]   ;;  %s320_s14 = smov [#allocation3]  }
   0x3   :  { %s28_s13 = sshll.u32 %s319_s12, 4  ;;  %s16_s15 = sshll.u32 %s320_s14, 4  ;;  %s29_s13 = int_to_ptr.vmem [resolvable:$true] %s28_s13  ;;  %s346_s15 = int_to_ptr.vmem [resolvable:$true] %s16_s15 }
   0x4   :  { %s225_s18 = scalar_lea.hbm %s417_s1, 512 }
   0x5   :  { %p226_p0 = scmp.ne.s32.totalorder %s417_s1, %s225_s18  ;;  %p229_p1 = scmp.lt.u32.totalorder %s225_s18, %s417_s1 }
   0x7   :  { %p231_p2 = pnand %p229_p1, %p226_p0 }
   0x9   :  { %234 = shalt.err (!%p231_p2)
}
   0xa   :  { %s235_s23 = scalar_lea.vmem %s29_s13, 512  ;;  %p240_p4 = scmp.lt.s32.totalorder %s29_s13, %s29_s13 }
   0xb   :  { %p236_p3 = scmp.ne.s32.totalorder %s29_s13, %s235_s23  ;;  %p241_p5 = scmp.lt.s32.totalorder %s235_s23, %s235_s23 }
   0xd   :  { %p242_p6 = por %p241_p5, %p240_p4 }
   0xf   :  { %p243_p7 = pnand %p242_p6, %p236_p3 }
  0x11   :  { %246 = shalt.err (!%p243_p7)
}
  0x12   :  { %s321_s24 = smov 128   ;;  %s322_s25 = smov 8  }
  0x13   :  { %34 = dma.hbm_to_vmem [thread:$0]  %s417_s1, 512, %s29_s13, [#allocation7], %s321_s24, %s321_s24, %s322_s25  }
  0x14   :  { %s247_s30 = scalar_lea.hbm %s416_s0, 256 }
  0x15   :  { %p248_p8 = scmp.ne.s32.totalorder %s416_s0, %s247_s30  ;;  %p251_p9 = scmp.lt.u32.totalorder %s247_s30, %s416_s0 }
  0x17   :  { %p253_p10 = pnand %p251_p9, %p248_p8 }
  0x19   :  { %256 = shalt.err (!%p253_p10)
}
  0x1a   :  { %s257_s8 = scalar_lea.vmem %s346_s15, 256  ;;  %p262_p12 = scmp.lt.s32.totalorder %s346_s15, %s346_s15 }
  0x1b   :  { %p258_p11 = scmp.ne.s32.totalorder %s346_s15, %s257_s8  ;;  %p263_p13 = scmp.lt.s32.totalorder %s257_s8, %s257_s8 }
  0x1d   :  { %p264_p0 = por %p263_p13, %p262_p12 }
  0x1f   :  { %p265_p1 = pnand %p264_p0, %p258_p11 }
  0x21   :  { %268 = shalt.err (!%p265_p1)
}
  0x22   :  { %22 = dma.hbm_to_vmem [thread:$0]  %s416_s0, 256, %s346_s15, [#allocation4], %s321_s24, %s321_s24, %s322_s25  }
  0x23   :  { %s323_s10 = smov [#allocation8]   ;;  %s269_s14 = scalar_lea.hbm %s418_s2, 16 }
  0x24   :  { %s41_s11 = sshll.u32 %s323_s10, 4  ;;  %p270_p2 = scmp.ne.s32.totalorder %s418_s2, %s269_s14  ;;  %s42_s11 = int_to_ptr.vmem [resolvable:$true] %s41_s11 }
  0x25   :  { %p273_p3 = scmp.lt.u32.totalorder %s269_s14, %s418_s2 }
  0x27   :  { %p275_p4 = pnand %p273_p3, %p270_p2 }
  0x29   :  { %278 = shalt.err (!%p275_p4)
}
  0x2a   :  { %s279_s20 = scalar_lea.vmem %s42_s11, 16  ;;  %s283_s0 = scalar_lea.vmem %s42_s11, 32 }
  0x2b   :  { %p280_p5 = scmp.ne.s32.totalorder %s42_s11, %s279_s20  ;;  %p284_p6 = scmp.lt.s32.totalorder %s42_s11, %s42_s11 }
  0x2c   :  { %p285_p7 = scmp.lt.s32.totalorder %s283_s0, %s279_s20 }
  0x2e   :  { %p286_p8 = por %p285_p7, %p284_p6 }
  0x30   :  { %p287_p9 = pnand %p286_p8, %p280_p5 }
  0x32   :  { %290 = shalt.err (!%p287_p9)
}
  0x33   :  { %44 = dma.hbm_to_vmem [thread:$0]  %s418_s2, 16, %s42_s11, [#allocation7]  }
  0x34   :  { %313 = dma.done.wait [#allocation4], 256  }
  0x35   :  { %314 = vsyncadd [#allocation4], 4294967040 }
  0x36   :  { %315 = dma.done.wait [#allocation7], 528  }
  0x37   :  { %316 = vsyncadd [#allocation7], 4294966768  ;;  %vm58_vm0 = vcmask 785408   ;;  %v324_v0 = vmov 0.0   ;;  %vm69_vm1 = vcmask 261120   ;;  %v65_v1 = vld [vmem:[#allocation6] sm:$0xff] }
  0x38   :  { %60 = vst.msk [vmem:[#allocation2 + $0x8] sm:$0xff] %vm58_vm0, %v324_v0  ;;  %59 = vst.msk [vmem:[#allocation2] sm:$0xff] %vm58_vm0, %v324_v0  ;;  %v66_v2 = vld [vmem:[#allocation6 + $0x8] sm:$0xff]  ;;  %v67_v3 = vld [vmem:[#allocation6 + $0x10] sm:$0xff]  ;;  %s325_s2 = smov [#allocation9]  }
  0x39   :  { %v210_v4 = vpack.c.bf16 %v66_v2, %v65_v1  ;;  %v68_v5 = vld [vmem:[#allocation6 + $0x18] sm:$0xff]  ;;  %v63_v6 = vld [vmem:[#allocation3] sm:$0xff]  ;;  %v192_v15 = vld [vmem:[#allocation8] ss:$0 sm:$0xff]  ;;  %s177_s22 = sshll.u32 %s325_s2, 4  ;;  %s178_s22 = int_to_ptr.vmem [resolvable:$true] %s177_s22 }
  0x3a   :  { %v214_v7 = vpack.c.bf16 %v68_v5, %v67_v3  ;;  %207 = vmatprep.mubr.msk.f32.mxu0 %vm69_vm1, %v63_v6  ;;  %v64_v8 = vld [vmem:[#allocation3 + $0x8] sm:$0xff]  ;;  %s291_s23 = scalar_lea.vmem %s178_s22, 256  ;;  %p296_p11 = scmp.lt.s32.totalorder %s178_s22, %s178_s22 }
  0x3b   :  { %211 = vmatprep.subr.bf16.mxu0 %v210_v4  ;;  %p292_p10 = scmp.ne.s32.totalorder %s178_s22, %s291_s23  ;;  %p297_p12 = scmp.lt.s32.totalorder %s291_s23, %s291_s23 }
  0x3c   :  { %213 = vmatpush3.bf16.msra.mxu0 %v210_v4 }
  0x3d   :  { %215 = vmatprep.subr.bf16.mxu0 %v214_v7  ;;  %p298_p13 = por %p297_p12, %p296_p11 }
  0x3f   :  { %v62_v9 = vld [vmem:[#allocation2 + $0x8] sm:$0xff]  ;;  %v61_v10 = vld [vmem:[#allocation2] sm:$0xff]  ;;  %p299_p0 = pnand %p298_p13, %p292_p10 }
  0x40   :  { %217 = vmatpush3.bf16.msra.mxu0 %v214_v7 }
  0x43   :  { %208 = vmatmul.mubr.msk.f32.vlgmr.msra.gmra.mrb[0].mxu0 %vm69_vm1, %v64_v8 }
 0x116   :  { %v209_v11 = vpop.f32.mrb[0].mxu0 }
 0x117   :  { %v152_v12 = vadd.f32 %v209_v11, %v62_v9  ;;  %v142_v13 = vpop.f32.mrb[1].mxu0 }
 0x118   :  { %v151_v14 = vadd.f32 %v142_v13, %v61_v10 }
 0x119   :  { %155 = vst.msk [vmem:[#allocation2 + $0x8] sm:$0xff] %vm58_vm0, %v152_v12 }
 0x11a   :  { %154 = vst.msk [vmem:[#allocation2] sm:$0xff] %vm58_vm0, %v151_v14 }
 0x120   :  { %v160_v16 = vld [vmem:[#allocation2 + $0x8] sm:$0xff] }
 0x121   :  { %v159_v17 = vld [vmem:[#allocation2] sm:$0xff]  ;;  %v169_v18 = vadd.f32 %v192_v15, %v160_v16 }
 0x122   :  { %v168_v19 = vadd.f32 %v192_v15, %v159_v17 }
 0x123   :  { %171 = vst.msk [vmem:[#allocation9 + $0x8] sm:$0xff] %vm58_vm0, %v169_v18 }
 0x124   :  { %170 = vst.msk [vmem:[#allocation9] sm:$0xff] %vm58_vm0, %v168_v19 }
 0x125   :  { %302 = shalt.err (!%p299_p0)
}
 0x126   :  { %s303_s28 = scalar_lea.hbm %s419_s3, 256 }
 0x127   :  { %p304_p1 = scmp.ne.s32.totalorder %s419_s3, %s303_s28  ;;  %p307_p2 = scmp.lt.u32.totalorder %s303_s28, %s419_s3 }
 0x129   :  { %p309_p3 = pnand %p307_p2, %p304_p1 }
 0x12b   :  { %312 = shalt.err (!%p309_p3)
}
 0x12c   :  { %183 = dma.vmem_to_hbm [thread:$0]  %s178_s22, 256, %s419_s3, [#allocation5], %s321_s24, %s321_s24, %s322_s25  }
 0x12d   :  { %317 = dma.done.wait [#allocation5], 256  }
 0x12e   :  { %318 = vsyncadd [#allocation5], 4294967040 }
 0x12f   :  { %187 = vsyncpa [#allocation4], 1 }
 0x130   :  { %188 = vsyncpa [#allocation7], 1 }
 0x131   :  { %189 = vsyncpa [#allocation5], 1 }

</bundles_post_ra>
